<compile_context>
chip_gen: v7x
topology: tpu7x:2x2x1
jax: 0.10.0
libtpu: 0.0.40
codegen_flags: <defaults>
</compile_context>

<pallas_src>
import jax
import jax.numpy as jnp
from jax.experimental import pallas as pl
from jax.experimental.pallas import tpu as pltpu


def _gram_kernel(mi_ref, mj_ref, o_ref):
    # mi_ref, mj_ref: (TB, tn, 4) slices of M^T (Lorentz axis last)
    # o_ref:          (TB, tn, tn) Gram block
    mi = mi_ref[...]
    mj = mj_ref[...]
    # Minkowski metric diag(+1,-1,-1,-1) as a sign flip along the Lorentz axis
    # (pure VPU; no Q operand, no K=4 matmul against a 4x4).
    k_idx = jax.lax.broadcasted_iota(jnp.int32, mi.shape, dimension=2)
    mi_signed = jnp.where(k_idx == 0, mi, -mi)
    # out[b, i, j] = sum_k sign(k) * M[b, k, i] * M[b, k, j]
    o_ref[...] = jnp.einsum(
        "bik,bjk->bij", mi_signed, mj, preferred_element_type=jnp.float32
    )


def _largest_divisor_leq(n, cap):
    cap = max(1, min(n, cap))
    for d in range(cap, 0, -1):
        if n % d == 0:
            return d
    return 1


def invariant_poly(M):
    """M: (B, 4, N) -> (B, N*N) float32, flatten(M^T Q M), Q = diag(+1,-1,-1,-1)."""
    M = jnp.asarray(M, dtype=jnp.float32)
    B, four, N = M.shape
    assert four == 4, "InvariantPoly expects 4-vectors along axis 1"

    # Wrapper-side layout plumbing: put the (size-4) contraction axis last.
    Mt = jnp.swapaxes(M, 1, 2)  # (B, N, 4)

    # --- Gram tile size -------------------------------------------------------
    # Lane-dense multiple of 128 when possible; otherwise the full extent N
    # (always a legal block because it equals the array dimension).
    if N % 128 == 0 and N > 512:
        tn = next(c for c in (512, 256, 128) if N % c == 0)
    else:
        tn = N
    # TODO(synk): very large N that is not a multiple of 128 falls back to a
    # single (N, N) output block per step; a remainder-tile path would bound
    # VMEM in that corner.

    # --- events per grid step -------------------------------------------------
    # Keep the f32 output block <= ~2 MiB (x2 pipeline buffers stays far below
    # the 16/32 MiB default scoped VMEM on v5e/v6e/v7x).
    tb_cap = max(1, (2 * 1024 * 1024) // (tn * tn * 4))
    tb = _largest_divisor_leq(B, min(tb_cap, 64))
    # Keep at least 2 grid steps so v7x's two TensorCores both get work.
    if B > 1 and (B // tb) * (N // tn) ** 2 == 1:
        tb = _largest_divisor_leq(B, max(1, tb // 2))

    grid = (B // tb, N // tn, N // tn)

    cost = pl.CostEstimate(
        flops=2 * 4 * N * N * B,
        transcendentals=0,
        bytes_accessed=(2 * 4 * N + N * N) * 4 * B,
    )

    out = pl.pallas_call(
        _gram_kernel,
        out_shape=jax.ShapeDtypeStruct((B, N, N), jnp.float32),
        grid_spec=pltpu.PrefetchScalarGridSpec(
            num_scalar_prefetch=0,
            grid=grid,
            in_specs=[
                pl.BlockSpec((tb, tn, 4), lambda b, i, j: (b, i, 0)),
                pl.BlockSpec((tb, tn, 4), lambda b, i, j: (b, j, 0)),
            ],
            out_specs=pl.BlockSpec((tb, tn, tn), lambda b, i, j: (b, i, j)),
        ),
        compiler_params=pltpu.CompilerParams(
            dimension_semantics=("parallel", "parallel", "parallel"),
        ),
        cost_estimate=cost,
    )(Mt, Mt)

    # flatten(start_dim=1): contiguous row-major reshape, free in XLA.
    return out.reshape(B, N * N)


def _reference(M):
    """Pure-JAX reference mirroring the PyTorch forward."""
    B = M.shape[0]
    Q = -jnp.eye(4, dtype=jnp.float32)
    Q = Q.at[0, 0].set(1.0)
    Q = jnp.broadcast_to(Q[None], (B, 4, 4))
    C = jnp.matmul(jnp.swapaxes(M, -1, -2), Q)
    C = jnp.matmul(C, M)
    return C.reshape(B, -1)


if __name__ == "__main__":
    key = jax.random.PRNGKey(0)
    k1, k2 = jax.random.split(key)

    # Small config: exercises the N < 128 (full-extent block) path + TB batching.
    B1, N1 = 8, 16
    M1 = jax.random.normal(k1, (B1, 4, N1), dtype=jnp.float32)
    out1 = jax.block_until_ready(invariant_poly(M1))
    ref1 = _reference(M1)
    assert out1.shape == (B1, N1 * N1)
    assert jnp.allclose(out1, ref1, atol=1e-3, rtol=1e-3), "mismatch (small N)"

    # Larger config: exercises the lane-dense 128-multiple Gram-tiling path.
    B2, N2 = 2, 768
    M2 = jax.random.normal(k2, (B2, 4, N2), dtype=jnp.float32)
    out2 = jax.block_until_ready(invariant_poly(M2))
    ref2 = _reference(M2)
    assert out2.shape == (B2, N2 * N2)
    assert jnp.allclose(out2, ref2, atol=1e-3, rtol=1e-3), "mismatch (tiled N)"

    print("KERNEL_OK")
</pallas_src>

<mosaic_0001>
module attributes {stable_mosaic.version = 11 : i64} {
  func.func @_gram_kernel(%arg0: i32, %arg1: i32, %arg2: i32, %arg3: memref<4x16x4xf32, #tpu.memory_space<vmem>>, %arg4: memref<4x16x4xf32, #tpu.memory_space<vmem>>, %arg5: memref<4x16x16xf32, #tpu.memory_space<vmem>>) attributes {dimension_semantics = [#tpu.dimension_semantics<parallel>, #tpu.dimension_semantics<parallel>, #tpu.dimension_semantics<parallel>], iteration_bounds = array<i64: 2, 1, 1>, scalar_prefetch = 0 : i64, scratch_operands = 0 : i64, tpu.core_type = #tpu.core_type<tc>, window_params = [{transform_indices = @transform_0, window_bounds = array<i64: 4, 16, 4>}, {transform_indices = @transform_1, window_bounds = array<i64: 4, 16, 4>}, {transform_indices = @transform_2, window_bounds = array<i64: 4, 16, 16>}]} {
    %c0 = arith.constant 0 : index
    %c0_0 = arith.constant 0 : index
    %c0_1 = arith.constant 0 : index
    %0 = vector.load %arg3[%c0, %c0_0, %c0_1] : memref<4x16x4xf32, #tpu.memory_space<vmem>>, vector<4x16x4xf32>
    %c0_2 = arith.constant 0 : index
    %c0_3 = arith.constant 0 : index
    %c0_4 = arith.constant 0 : index
    %1 = vector.load %arg4[%c0_2, %c0_3, %c0_4] : memref<4x16x4xf32, #tpu.memory_space<vmem>>, vector<4x16x4xf32>
    %2 = tpu.iota {dimensions = array<i32: 2>} : vector<4x16x4xi32>
    %c0_i32 = arith.constant 0 : i32
    %3 = vector.broadcast %c0_i32 : i32 to vector<4x16x4xi32>
    %4 = arith.cmpi eq, %2, %3 : vector<4x16x4xi32>
    %cst = arith.constant 0.000000e+00 : f32
    %5 = vector.broadcast %cst : f32 to vector<4x16x4xf32>
    %6 = arith.subf %5, %0 : vector<4x16x4xf32>
    %7 = arith.select %4, %0, %6 : vector<4x16x4xi1>, vector<4x16x4xf32>
    "tpu.trace_start"() <{level = 10 : i32, message = "bik,bjk->bij"}> : () -> ()
    %cst_5 = arith.constant dense<0.000000e+00> : vector<4x16x16xf32>
    %8 = tpu.matmul %7, %1, %cst_5 {dimension_numbers = #tpu.dot_dimension_numbers<[2], [2], [1], [1], [0, 0, 0, 1, 1, 1], [0], [0]>} : vector<4x16x4xf32>, vector<4x16x4xf32>, vector<4x16x16xf32> -> vector<4x16x16xf32>
    "tpu.trace_stop"() : () -> ()
    %c0_6 = arith.constant 0 : index
    %c0_7 = arith.constant 0 : index
    %c0_8 = arith.constant 0 : index
    %9 = vector.load %arg5[%c0_6, %c0_7, %c0_8] : memref<4x16x16xf32, #tpu.memory_space<vmem>>, vector<4x16x16xf32>
    tpu.vector_store %arg5[%c0_6, %c0_7, %c0_8], %8 {strides = array<i32>} : memref<4x16x16xf32, #tpu.memory_space<vmem>>, vector<4x16x16xf32>,
    return
  }
  func.func @transform_0(%arg0: i32, %arg1: i32, %arg2: i32) -> (i32, i32, i32) {
    %c0_i32 = arith.constant 0 : i32
    %c0_i32_0 = arith.constant 0 : i32
    return %arg0, %arg1, %c0_i32 : i32, i32, i32
  }
  func.func @transform_1(%arg0: i32, %arg1: i32, %arg2: i32) -> (i32, i32, i32) {
    %c0_i32 = arith.constant 0 : i32
    %c0_i32_0 = arith.constant 0 : i32
    return %arg0, %arg2, %c0_i32 : i32, i32, i32
  }
  func.func @transform_2(%arg0: i32, %arg1: i32, %arg2: i32) -> (i32, i32, i32) {
    %c0_i32 = arith.constant 0 : i32
    return %arg0, %arg1, %arg2 : i32, i32, i32
  }
}

</mosaic_0001>

<bundles_post_ra>
// kernel: tpu_custom_call.1
= control target key start
LH: loop header
LB: loop body
LE: loop exit
PB: predicated region body
PF: predicated region fallthrough
CT: control target
= control target key end

     0   :  { %7 = vsyncpa [#allocation3], 0  ;;  %s1175_s0 = inlined_call_operand.vmem [shape: f32[8,16,4], index: 0, kind: input, shape index: {}]   ;;  %s1176_s1 = inlined_call_operand.vmem [shape: f32[8,16,4], index: 1, kind: input, shape index: {}]   ;;  %s1177_s2 = inlined_call_operand.hbm [shape: f32[8,16,16], index: 2, kind: output, shape index: {}]  }
   0x1   :  { %9 = vsyncpa [#allocation3 + $0x1], 0  ;;  %s1002_s9 = smov 0   ;;  %s1004_s10 = smov 0  }
   0x2   :  { %s1006_s11 = smov 0   ;;  %s1008_s12 = smov 0  }
   0x3   :  { %s1010_s13 = smov 0   ;;  %s1012_s14 = smov 0  }
   0x4 LB: > { %s741_s15 = sadd.s32 4294967295, %s982_s14   ;;  %s742_s16 = sadd.s32 4294967294, %s982_s14   ;;  %s982_s14 = sphi %s1012_s14, %s15_s14   ;;  %s978_s13 = sphi %s1010_s13, %s1186_s13   ;;  %s974_s12 = sphi %s1008_s12, %s1185_s12   ;;  %s970_s11 = sphi %s1006_s11, %s1184_s11   ;;  %s966_s10 = sphi %s1004_s10, %s1183_s10   ;;  %s962_s9 = sphi %s1002_s9, %s1182_s9  }
   0x5   : > { %s34_s17 = sadd.s32 1, %s978_s13  ;;  %s101_s18 = sadd.s32 1, %s970_s11 }
   0x6   : > { %p36_p0 = scmp.ge.s32.totalorder %s34_s17, 2  ;;  %p111_p1 = scmp.ne.s32.totalorder %s970_s11, %s966_s10 }
   0x7   : > { %p112_p2 = scmp.eq.s32.totalorder %s741_s15, 1  ;;  %p117_p3 = scmp.ne.s32.totalorder %s966_s10, %s962_s9 }
   0x8   : > { %s1188_s17 = smov (%p36_p0, %s34_s17), 0  ;;  %p118_p5 = scmp.eq.s32.totalorder %s742_s16, 1 }
   0x9   : > { %p1042_p4 = por %p112_p2, %p111_p1  ;;  %s94_s20 = ssub.s32 %s978_s13, %s1188_s17 }
   0xa   : > { %p745_p6 = scmp.ge.s32.totalorder %s982_s14, 1  ;;  %p99_p7 = scmp.eq.s32.totalorder %s94_s20, 0 }
   0xb   : > { %p1049_p8 = por %p118_p5, %p117_p3  ;;  %p166_p9 = scmp.lt.s32.totalorder %s982_s14, 3 }
   0xc   : > { %s1055_s22 = scalar_select %p99_p7, %s970_s11, %s101_s18  }
   0xd   : > { %p167_p10 = pnand %p745_p6, %p166_p9 }
   0xe   : > { %s747_s23 = sshll.u32 (!%p167_p10), %s974_s12, 2  ;;  %v245_v0 = vlaneseq (!%p167_p10)  ;;  %vm264_vm0 = vcmask (!%p167_p10), 31744   ;;  %s200_s3 = sand.u32 (!%p167_p10), 1, %s966_s10   ;;  %vm613_vm3 = vcmask (!%p167_p10), 130048  }
   0xf   : > { %170 = sbr.rel (%p167_p10) target bundleno = 273 (0x111), region = 28  ;;  %p205_p11 = scmp.lt.s32.totalorder (!%p167_p10), %s747_s23, 7  ;;  %vm1063_vm1 = vmpackc.low (!%p167_p10), %vm264_vm0, %vm264_vm0 }
  0x10   : > { %v246_v1 = vand.u32 (!%p167_p10), 127, %v245_v0  ;;  %s746_s4 = sshll.u32 (!%p167_p10), %s200_s3, 6  ;;  %s778_s6 = sshll.u32 (!%p167_p10), %s974_s12, 10 }
  0x11   : > { %s202_s5 = scalar_lea.vmem (!%p167_p10), [#allocation2], %s746_s4  ;;  %s1121_s16 = scalar_lea.hbm (!%p167_p10), %s1177_s2, %s778_s6 }
  0x12   : > { %vm247_vm2 = vcmp.eq.s32.totalorder (!%p167_p10), %v246_v1, 0  ;;  %s640_s7 = sshll.u32 (!%p167_p10), %s202_s5, 4  ;;  %s1129_s12 = scalar_lea.sflag (!%p167_p10), [#allocation3], %s200_s3  ;;  %s1123_s7 = int_to_ptr.vmem [resolvable:$true] %s640_s7 }
  0x13   : > { %s904_s18 = scalar_lea.vmem (!%p167_p10), %s1123_s7, 1024  ;;  %s984_s20 = smov (!%p167_p10), [#allocation2]  }
  0x14   : > { %p905_p12 = scmp.ne.s32.totalorder (!%p167_p10), %s1123_s7, %s904_s18 }
  0x16   : > { %s1190_s23 = smov (!%p205_p11, %s747_s23), 7  ;;  %p906_p13 = pnand %p905_p12, %p1042_p4 }
  0x17   : > { %s775_s24 = sshll.u32 %s1190_s23, 4  ;;  %s908_s23 = sshll.u32 %s984_s20, 4  ;;  %s909_s23 = int_to_ptr.vmem [resolvable:$false] %s908_s23 }
  0x18   : > { %s224_s27 = scalar_lea.vmem %s1176_s1, %s775_s24  ;;  %s1070_s30 = scalar_lea.vmem %s1175_s0, %s775_s24 }
  0x19   : > { %v237_v3 = vld [vmem:[%s224_s27] sm:$0xff]  ;;  %v238_v4 = vld [vmem:[%s224_s27 + $0x8] sm:$0xff]  ;;  %v239_v5 = vld [vmem:[%s224_s27 + $0x10] sm:$0xff]  ;;  %p907_p0 = pneg %p906_p13  ;;  %s910_s24 = scalar_lea.vmem %s909_s23, 2048 }
  0x1a   : > { %v823_v6 = vpack.c.bf16 %v238_v4, %v237_v3  ;;  %v240_v7 = vld [vmem:[%s224_s27 + $0x18] sm:$0xff]  ;;  %v229_v8 = vld [vmem:[%s1070_s30] sm:$0xff]  ;;  %v231_v9 = vld [vmem:[%s1070_s30 + $0x10] sm:$0xff]  ;;  %p911_p1 = scmp.lt.s32.totalorder %s1123_s7, %s909_s23  ;;  %p912_p2 = scmp.lt.s32.totalorder %s910_s24, %s904_s18 }
  0x1b   : > { %v829_v10 = vpack.c.bf16 %v240_v7, %v239_v5  ;;  %v248_v11 = vsub.f32 0.0, %v229_v8  ;;  %v250_v12 = vsub.f32 0.0, %v231_v9  ;;  %v230_v13 = vld [vmem:[%s1070_s30 + $0x8] sm:$0xff]  ;;  %v232_v14 = vld [vmem:[%s1070_s30 + $0x18] sm:$0xff]  ;;  %v241_v15 = vld [vmem:[%s224_s27 + $0x20] sm:$0xff] }
  0x1c   : > { %825 = vmatprep.subr.msk.bf16.mxu0 %vm1063_vm1, %v823_v6  ;;  %v242_v16 = vld [vmem:[%s224_s27 + $0x28] sm:$0xff]  ;;  %v243_v17 = vld [vmem:[%s224_s27 + $0x30] sm:$0xff]  ;;  %v244_v18 = vld [vmem:[%s224_s27 + $0x38] sm:$0xff]  ;;  %v249_v21 = vsub.f32 0.0, %v230_v13  ;;  %v251_v25 = vsub.f32 0.0, %v232_v14  ;;  %p913_p3 = por %p912_p2, %p911_p1 }
  0x1d   : > { %831 = vmatprep.subr.msk.bf16.mxu1 %vm1063_vm1, %v829_v10  ;;  %828 = vmatpush3.bf16.xpose.msk.msra.mxu0 %vm1063_vm1, %v823_v6  ;;  %v256_v19 = vsel %vm247_vm2, %v229_v8, %v248_v11  ;;  %v258_v20 = vsel %vm247_vm2, %v231_v9, %v250_v12  ;;  %v835_v22 = vpack.c.bf16 %v242_v16, %v241_v15  ;;  %v233_v23 = vld [vmem:[%s1070_s30 + $0x20] sm:$0xff]  ;;  %v235_v24 = vld [vmem:[%s1070_s30 + $0x30] sm:$0xff]  ;;  %v234_v31 = vld [vmem:[%s1070_s30 + $0x28] sm:$0xff] }
  0x1e   : > { %834 = vmatpush3.bf16.xpose.msk.msra.mxu1 %vm1063_vm1, %v829_v10  ;;  %799 = vmatprep.mubr.msk.f32.mxu0 %vm264_vm0, %v256_v19  ;;  %v841_v26 = vpack.c.bf16 %v244_v18, %v243_v17  ;;  %v252_v27 = vsub.f32 0.0, %v233_v23  ;;  %v254_v28 = vsub.f32 0.0, %v235_v24  ;;  %v257_v29 = vsel %vm247_vm2, %v230_v13, %v249_v21  ;;  %v236_v33 = vld [vmem:[%s1070_s30 + $0x38] sm:$0xff]  ;;  %p914_p5 = pnand %p913_p3, %p907_p0 }
  0x1f   : > { %806 = vmatprep.mubr.msk.f32.mxu1 %vm264_vm0, %v258_v20  ;;  %837 = vmatprep.subr.msk.bf16.mxu0 %vm1063_vm1, %v835_v22  ;;  %v259_v30 = vsel %vm247_vm2, %v232_v14, %v251_v25  ;;  %v253_v35 = vsub.f32 0.0, %v234_v31  ;;  %v255_v36 = vsub.f32 0.0, %v236_v33 }
  0x20   : > { %843 = vmatprep.subr.msk.bf16.mxu1 %vm1063_vm1, %v841_v26  ;;  %v260_v32 = vsel %vm247_vm2, %v233_v23, %v252_v27  ;;  %v262_v34 = vsel %vm247_vm2, %v235_v24, %v254_v28 }
  0x21   : > { %v261_v37 = vsel %vm247_vm2, %v234_v31, %v253_v35  ;;  %v263_v38 = vsel %vm247_vm2, %v236_v33, %v255_v36 }
  0x24   : > { %800 = vmatmul.mubr.msk.f32.vlgmr.msra.gmra.mrb[0].mxu0 %vm264_vm0, %v257_v29 }
  0x25   : > { %807 = vmatmul.mubr.msk.f32.vlgmr.msra.gmra.mrb[0].mxu1 %vm264_vm0, %v259_v30  ;;  %840 = vmatpush3.bf16.xpose.msk.msra.mxu0 %vm1063_vm1, %v835_v22 }
  0x26   : > { %846 = vmatpush3.bf16.xpose.msk.msra.mxu1 %vm1063_vm1, %v841_v26  ;;  %813 = vmatprep.mubr.msk.f32.mxu0 %vm264_vm0, %v260_v32 }
  0x27   : > { %820 = vmatprep.mubr.msk.f32.mxu1 %vm264_vm0, %v262_v34 }
  0x2c   : > { %814 = vmatmul.mubr.msk.f32.vlgmr.msra.gmra.mrb[2].mxu0 %vm264_vm0, %v261_v37 }
  0x2d   : > { %821 = vmatmul.mubr.msk.f32.vlgmr.msra.gmra.mrb[2].mxu1 %vm264_vm0, %v263_v38 }
  0xf7   : > { %v801_v39 = vpop.f32.mrb[0].mxu0 }
  0xf8   : > { %615 = vst.msk [vmem:[%s202_s5 + $0x8] sm:$0xff] %vm613_vm3, %v801_v39  ;;  %v808_v40 = vpop.f32.mrb[0].mxu1  ;;  %v343_v41 = vpop.f32.mrb[1].mxu0 }
  0xf9   : > { %617 = vst.msk [vmem:[%s202_s5 + $0x18] sm:$0xff] %vm613_vm3, %v808_v40  ;;  %614 = vst.msk [vmem:[%s202_s5] sm:$0xff] %vm613_vm3, %v343_v41  ;;  %v430_v42 = vpop.f32.mrb[1].mxu1 }
  0xfa   : > { %616 = vst.msk [vmem:[%s202_s5 + $0x10] sm:$0xff] %vm613_vm3, %v430_v42 }
  0xff   : > { %v815_v43 = vpop.f32.mrb[2].mxu0 }
 0x100   : > { %619 = vst.msk [vmem:[%s202_s5 + $0x28] sm:$0xff] %vm613_vm3, %v815_v43  ;;  %v822_v44 = vpop.f32.mrb[2].mxu1  ;;  %v517_v45 = vpop.f32.mrb[3].mxu0 }
 0x101   : > { %621 = vst.msk [vmem:[%s202_s5 + $0x38] sm:$0xff] %vm613_vm3, %v822_v44  ;;  %618 = vst.msk [vmem:[%s202_s5 + $0x20] sm:$0xff] %vm613_vm3, %v517_v45  ;;  %v604_v46 = vpop.f32.mrb[3].mxu1 }
 0x102   : > { %620 = vst.msk [vmem:[%s202_s5 + $0x30] sm:$0xff] %vm613_vm3, %v604_v46 }
 0x103   : > { %917 = shalt.err (!%p914_p5)
}
 0x104   : > { %s918_s25 = scalar_lea.hbm %s1121_s16, 1024  ;;  %s922_s28 = scalar_lea.hbm %s1177_s2, 2048 }
 0x105   : > { %p919_p6 = scmp.ne.s32.totalorder %s1121_s16, %s918_s25  ;;  %p923_p10 = scmp.lt.u32.totalorder %s1121_s16, %s1177_s2 }
 0x106   : > { %p924_p11 = scmp.lt.u32.totalorder %s922_s28, %s918_s25  ;;  %p926_p13 = scmp.lt.u32.totalorder %s918_s25, %s1121_s16 }
 0x107   : > { %p920_p7 = pnand %p919_p6, %p1042_p4 }
 0x108   : > { %p925_p12 = por %p924_p11, %p923_p10 }
 0x109   : > { %p921_p9 = pneg %p920_p7 }
 0x10a   : > { %p927_p0 = por %p926_p13, %p925_p12 }
 0x10c   : > { %p928_p1 = pnand %p927_p0, %p921_p9 }
 0x10e   : > { %931 = shalt.err (!%p928_p1)
}
 0x10f   : > { %s985_s3 = smov 128   ;;  %s986_s4 = smov 8  }
 0x110   : > { %847 = dma.vmem_to_hbm [thread:$0]  (%p1042_p4), %s1123_s7, 1024, %s1121_s16, %s1129_s12, %s985_s3, %s985_s3, %s986_s4  }
 0x111 PF: > { %p853_p2 = scmp.ge.s32.totalorder %s982_s14, 2  ;;  %s655_s5 = sand.u32 1, %s962_s9  }
 0x112   : > { %s656_s6 = scalar_lea.sflag [#allocation3], %s655_s5 }
 0x113   : > { %p850_p3 = pnand %p853_p2, %p1049_p8 }
 0x115   : > { %957 = dma.done.wait (!%p850_p3), %s656_s6, 1024  }
 0x116   : > { %959 = vsyncadd (!%p850_p3), %s656_s6, 4294966272  ;;  %s15_s14 = sadd.s32 1, %s982_s14   ;;  %s1182_s9 = smov %s966_s10 }
 0x117   : > { %p12_p5 = scmp.ge.s32.totalorder %s15_s14, 4   ;;  %s1183_s10 = smov %s970_s11 }
 0x118   : > { %s1184_s11 = smov %s1055_s22  ;;  %s1185_s12 = smov %s978_s13 }
 0x119   : > { %s1186_s13 = smov %s1188_s17  ;;  %14 = sbr.rel (!%p12_p5) target bundleno = 4 (0x4), region = 66 }
 0x120   :  { %661 = vsyncpa [#allocation3], 1 }
 0x121   :  { %663 = vsyncpa [#allocation3 + $0x1], 1 }

</bundles_post_ra>
